<compile_context>
chip_gen: v7x
topology: tpu7x:2x2x1
jax: 0.10.0
libtpu: 0.0.40
codegen_flags: <defaults>
</compile_context>

<pallas_src>
import functools

import jax
import jax.numpy as jnp
from jax.experimental import pallas as pl
from jax.experimental.pallas import tpu as pltpu


def _round_up(x: int, m: int) -> int:
    return ((x + m - 1) // m) * m


def _matmul_bias_kernel(x_ref, w_ref, b_ref, o_ref, acc_ref):
    # x_ref: (tm, tk)  w_ref: (tk, tn)  b_ref: (1, tn)  o_ref: (tm, tn)
    k = pl.program_id(2)

    @pl.when(k == 0)
    def _():
        acc_ref[...] = jnp.zeros_like(acc_ref)

    acc_ref[...] += jnp.dot(
        x_ref[...], w_ref[...], preferred_element_type=jnp.float32
    )

    @pl.when(k == pl.num_programs(2) - 1)
    def _():
        # Bias add only at writeback (kept in f32 for v5e VPU friendliness).
        o_ref[...] = (acc_ref[...] + b_ref[...].astype(jnp.float32)).astype(
            o_ref.dtype
        )


def _matmul_kernel(x_ref, w_ref, o_ref, acc_ref):
    k = pl.program_id(2)

    @pl.when(k == 0)
    def _():
        acc_ref[...] = jnp.zeros_like(acc_ref)

    acc_ref[...] += jnp.dot(
        x_ref[...], w_ref[...], preferred_element_type=jnp.float32
    )

    @pl.when(k == pl.num_programs(2) - 1)
    def _():
        o_ref[...] = acc_ref[...].astype(o_ref.dtype)


@functools.partial(
    jax.jit, static_argnames=("use_bias", "tm", "tn", "tk", "out_dtype")
)
def structured_layer_forward(
    x,
    weight,
    bias=None,
    *,
    use_bias=True,
    # Conservative per-generation-safe defaults (fit v5e's 16 MiB scoped VMEM
    # with double buffering). On v6e raise tk/tn (e.g. tn=512, tk=2048); on v7x
    # keep within the 64 MiB physical / 32 MiB scoped budget.
    tm=256,
    tn=256,
    tk=512,
    out_dtype=jnp.float32,
):
    """y = x @ weight.T (+ bias).  x: (B, In), weight: (Out, In), bias: (Out,)."""
    batch, input_dim = x.shape
    output_dim = weight.shape[0]

    # One-time HBM-side transpose -> canonical (K, N) MXU layout, lane-dense N.
    wt = weight.T  # (In, Out)

    # Clamp tiles to (8,128)-aligned padded problem sizes.
    tm = min(tm, _round_up(batch, 8))
    tn = min(tn, _round_up(output_dim, 128))
    tk = min(tk, _round_up(input_dim, 128))

    Mp = _round_up(batch, tm)
    Np = _round_up(output_dim, tn)
    Kp = _round_up(input_dim, tk)

    xp = jnp.pad(x, ((0, Mp - batch), (0, Kp - input_dim)))
    wtp = jnp.pad(wt, ((0, Kp - input_dim), (0, Np - output_dim)))

    grid = (Mp // tm, Np // tn, Kp // tk)
    out_shape = jax.ShapeDtypeStruct((Mp, Np), out_dtype)

    bytes_el_in = jnp.dtype(x.dtype).itemsize
    cost = pl.CostEstimate(
        flops=2 * Mp * Kp * Np,
        bytes_accessed=(Mp * Kp + Kp * Np) * bytes_el_in
        + Mp * Np * jnp.dtype(out_dtype).itemsize,
        transcendentals=0,
    )
    cparams = pltpu.CompilerParams(
        dimension_semantics=("parallel", "parallel", "arbitrary")
    )

    x_spec = pl.BlockSpec((tm, tk), lambda i, j, k: (i, k))
    w_spec = pl.BlockSpec((tk, tn), lambda i, j, k: (k, j))
    o_spec = pl.BlockSpec((tm, tn), lambda i, j, k: (i, j))
    scratch = [pltpu.VMEM((tm, tn), jnp.float32)]

    if use_bias:
        assert bias is not None
        bias2d = jnp.pad(
            bias.reshape(1, output_dim).astype(jnp.float32),
            ((0, 0), (0, Np - output_dim)),
        )
        b_spec = pl.BlockSpec((1, tn), lambda i, j, k: (0, j))
        yp = pl.pallas_call(
            _matmul_bias_kernel,
            out_shape=out_shape,
            grid_spec=pltpu.PrefetchScalarGridSpec(
                num_scalar_prefetch=0,
                grid=grid,
                in_specs=[x_spec, w_spec, b_spec],
                out_specs=o_spec,
                scratch_shapes=scratch,
            ),
            compiler_params=cparams,
            cost_estimate=cost,
        )(xp, wtp, bias2d)
    else:
        yp = pl.pallas_call(
            _matmul_kernel,
            out_shape=out_shape,
            grid_spec=pltpu.PrefetchScalarGridSpec(
                num_scalar_prefetch=0,
                grid=grid,
                in_specs=[x_spec, w_spec],
                out_specs=o_spec,
                scratch_shapes=scratch,
            ),
            compiler_params=cparams,
            cost_estimate=cost,
        )(xp, wtp)

    return yp[:batch, :output_dim]


def glorot_uniform(key, shape):
    # Matches get_random_glorot_uniform_matrix semantics: U(-limit, limit)
    # with limit = sqrt(6 / (fan_in + fan_out)).
    if len(shape) == 1:
        fan_in = fan_out = shape[0]
    else:
        fan_out, fan_in = shape[0], shape[1]
    limit = jnp.sqrt(6.0 / (fan_in + fan_out))
    return jax.random.uniform(key, shape, jnp.float32, -limit, limit)


if __name__ == "__main__":
    key = jax.random.PRNGKey(0)
    k_x, k_w, k_b, k_x2, k_w2, k_b2 = jax.random.split(key, 6)

    # --- Small shapes from the module's typical use (padded internally). ---
    batch, input_dim, output_dim = 2, 32, 16
    weight = glorot_uniform(k_w, (output_dim, input_dim))
    bias = glorot_uniform(k_b, (output_dim,))
    x = jax.random.normal(k_x, (batch, input_dim), jnp.float32)

    y = structured_layer_forward(x, weight, bias, use_bias=True)
    jax.block_until_ready(y)
    y_ref = x @ weight.T + bias[None, :]
    assert y.shape == (batch, output_dim)
    assert jnp.allclose(y, y_ref, atol=1e-5, rtol=1e-5)

    # No-bias path.
    y_nb = structured_layer_forward(x, weight, None, use_bias=False)
    jax.block_until_ready(y_nb)
    assert jnp.allclose(y_nb, x @ weight.T, atol=1e-5, rtol=1e-5)

    # bf16 operands (f32 accumulation) — the recommended fast path.
    y_bf = structured_layer_forward(
        x.astype(jnp.bfloat16), weight.astype(jnp.bfloat16), bias, use_bias=True
    )
    jax.block_until_ready(y_bf)
    assert jnp.allclose(y_bf, y_ref, atol=5e-2, rtol=5e-2)

    # --- Larger shapes exercising a multi-tile grid and K accumulation. ---
    B2, In2, Out2 = 64, 384, 256
    w2 = glorot_uniform(k_w2, (Out2, In2))
    b2 = glorot_uniform(k_b2, (Out2,))
    x2 = jax.random.normal(k_x2, (B2, In2), jnp.float32)
    y2 = structured_layer_forward(x2, w2, b2, use_bias=True, tm=64, tn=128, tk=128)
    jax.block_until_ready(y2)
    y2_ref = x2 @ w2.T + b2[None, :]
    assert jnp.allclose(y2, y2_ref, atol=1e-4, rtol=1e-4)

    print("KERNEL_OK")
</pallas_src>

<mosaic_0001>
module attributes {stable_mosaic.version = 11 : i64} {
  func.func @_matmul_bias_kernel(%arg0: i32, %arg1: i32, %arg2: i32, %arg3: memref<8x128xf32, #tpu.memory_space<vmem>>, %arg4: memref<128x128xf32, #tpu.memory_space<vmem>>, %arg5: memref<1x128xf32, #tpu.memory_space<vmem>>, %arg6: memref<8x128xf32, #tpu.memory_space<vmem>>, %arg7: memref<8x128xf32, #tpu.memory_space<vmem>>) attributes {dimension_semantics = [#tpu.dimension_semantics<parallel>, #tpu.dimension_semantics<parallel>, #tpu.dimension_semantics<arbitrary>], iteration_bounds = array<i64: 1, 1, 1>, scalar_prefetch = 0 : i64, scratch_operands = 1 : i64, tpu.core_type = #tpu.core_type<tc>, window_params = [{transform_indices = @transform_0, window_bounds = array<i64: 8, 128>}, {transform_indices = @transform_1, window_bounds = array<i64: 128, 128>}, {transform_indices = @transform_2, window_bounds = array<i64: 1, 128>}, {transform_indices = @transform_3, window_bounds = array<i64: 8, 128>}]} {
    %c0_i32 = arith.constant 0 : i32
    %0 = arith.cmpi eq, %arg2, %c0_i32 : i32
    %1 = arith.extui %0 : i1 to i32
    %c0_i32_0 = arith.constant 0 : i32
    %2 = arith.cmpi ne, %1, %c0_i32_0 : i32
    scf.if %2 {
      %cst_10 = arith.constant 0.000000e+00 : f32
      %12 = vector.broadcast %cst_10 : f32 to vector<8x128xf32>
      %c0_11 = arith.constant 0 : index
      %c0_12 = arith.constant 0 : index
      %13 = vector.load %arg7[%c0_11, %c0_12] : memref<8x128xf32, #tpu.memory_space<vmem>>, vector<8x128xf32>
      tpu.vector_store %arg7[%c0_11, %c0_12], %12 {strides = array<i32>} : memref<8x128xf32, #tpu.memory_space<vmem>>, vector<8x128xf32>,
    } else {
    }
    %c0 = arith.constant 0 : index
    %c0_1 = arith.constant 0 : index
    %3 = vector.load %arg7[%c0, %c0_1] : memref<8x128xf32, #tpu.memory_space<vmem>>, vector<8x128xf32>
    %c0_2 = arith.constant 0 : index
    %c0_3 = arith.constant 0 : index
    %4 = vector.load %arg3[%c0_2, %c0_3] : memref<8x128xf32, #tpu.memory_space<vmem>>, vector<8x128xf32>
    %c0_4 = arith.constant 0 : index
    %c0_5 = arith.constant 0 : index
    %5 = vector.load %arg4[%c0_4, %c0_5] : memref<128x128xf32, #tpu.memory_space<vmem>>, vector<128x128xf32>
    %cst = arith.constant dense<0.000000e+00> : vector<8x128xf32>
    %6 = tpu.matmul %4, %5, %cst {dimension_numbers = #tpu.dot_dimension_numbers<[1], [0], [0], [1], [0, 0, 1, 1], [], []>} : vector<8x128xf32>, vector<128x128xf32>, vector<8x128xf32> -> vector<8x128xf32>
    %7 = arith.addf %3, %6 : vector<8x128xf32>
    %c0_6 = arith.constant 0 : index
    %c0_7 = arith.constant 0 : index
    %8 = vector.load %arg7[%c0_6, %c0_7] : memref<8x128xf32, #tpu.memory_space<vmem>>, vector<8x128xf32>
    tpu.vector_store %arg7[%c0_6, %c0_7], %7 {strides = array<i32>} : memref<8x128xf32, #tpu.memory_space<vmem>>, vector<8x128xf32>,
    %c0_i32_8 = arith.constant 0 : i32
    %9 = arith.cmpi eq, %arg2, %c0_i32_8 : i32
    %10 = arith.extui %9 : i1 to i32
    %c0_i32_9 = arith.constant 0 : i32
    %11 = arith.cmpi ne, %10, %c0_i32_9 : i32
    scf.if %11 {
      %c0_10 = arith.constant 0 : index
      %c0_11 = arith.constant 0 : index
      %12 = vector.load %arg7[%c0_10, %c0_11] : memref<8x128xf32, #tpu.memory_space<vmem>>, vector<8x128xf32>
      %c0_12 = arith.constant 0 : index
      %c0_13 = arith.constant 0 : index
      %13 = vector.load %arg5[%c0_12, %c0_13] : memref<1x128xf32, #tpu.memory_space<vmem>>, vector<1x128xf32>
      %14 = vector.broadcast %13 : vector<1x128xf32> to vector<8x128xf32>
      %15 = arith.addf %12, %14 : vector<8x128xf32>
      %c0_14 = arith.constant 0 : index
      %c0_15 = arith.constant 0 : index
      %16 = vector.load %arg6[%c0_14, %c0_15] : memref<8x128xf32, #tpu.memory_space<vmem>>, vector<8x128xf32>
      tpu.vector_store %arg6[%c0_14, %c0_15], %15 {strides = array<i32>} : memref<8x128xf32, #tpu.memory_space<vmem>>, vector<8x128xf32>,
    } else {
    }
    return
  }
  func.func @transform_0(%arg0: i32, %arg1: i32, %arg2: i32) -> (i32, i32) {
    %c0_i32 = arith.constant 0 : i32
    return %arg0, %arg2 : i32, i32
  }
  func.func @transform_1(%arg0: i32, %arg1: i32, %arg2: i32) -> (i32, i32) {
    %c0_i32 = arith.constant 0 : i32
    return %arg2, %arg1 : i32, i32
  }
  func.func @transform_2(%arg0: i32, %arg1: i32, %arg2: i32) -> (i32, i32) {
    %c0_i32 = arith.constant 0 : i32
    %c0_i32_0 = arith.constant 0 : i32
    return %c0_i32, %arg1 : i32, i32
  }
  func.func @transform_3(%arg0: i32, %arg1: i32, %arg2: i32) -> (i32, i32) {
    %c0_i32 = arith.constant 0 : i32
    return %arg0, %arg1 : i32, i32
  }
}

</mosaic_0001>

<bundles_post_ra>
// kernel: structured_layer_forward.1
= control target key start
LH: loop header
LB: loop body
LE: loop exit
PB: predicated region body
PF: predicated region fallthrough
CT: control target
= control target key end

     0   :  { %v206_v0 = vmov 0.0|0.0   ;;  %vm207_vm0 = vmmov 0   ;;  %v208_v4 = vmov 0.0   ;;  %s286_s1 = inlined_call_operand.vmem [shape: f32[128,128], index: 1, kind: input, shape index: {}]   ;;  %s287_s0 = inlined_call_operand.vmem [shape: f32[8,128], index: 0, kind: input, shape index: {}]   ;;  %s288_s2 = inlined_call_operand.vmem [shape: f32[1,128], index: 2, kind: input, shape index: {}]   ;;  %s289_s3 = inlined_call_operand.vmem [shape: f32[8,128], index: 3, kind: output, shape index: {}]  }
   0x1   :  { %179 = vmatprep.subr.bf16.mxu0 %v206_v0  ;;  %v21_v1 = vld [vmem:[%s286_s1] sm:$0xff]  ;;  %v22_v2 = vld [vmem:[%s286_s1 + $0x8] sm:$0xff]  ;;  %v23_v3 = vld [vmem:[%s286_s1 + $0x10] sm:$0xff]  ;;  %176 = vmatprep.mubr.msk.f32.mxu0 %vm207_vm0, %v208_v4 }
   0x2   :  { %v180_v5 = vpack.c.bf16 %v22_v2, %v21_v1  ;;  %v24_v6 = vld [vmem:[%s286_s1 + $0x18] sm:$0xff]  ;;  %v25_v8 = vld [vmem:[%s286_s1 + $0x20] sm:$0xff]  ;;  %v26_v9 = vld [vmem:[%s286_s1 + $0x28] sm:$0xff] }
   0x3   :  { %v183_v7 = vpack.c.bf16 %v24_v6, %v23_v3  ;;  %v186_v10 = vpack.c.bf16 %v26_v9, %v25_v8  ;;  %v27_v11 = vld [vmem:[%s286_s1 + $0x30] sm:$0xff]  ;;  %v28_v12 = vld [vmem:[%s286_s1 + $0x38] sm:$0xff]  ;;  %v29_v14 = vld [vmem:[%s286_s1 + $0x40] sm:$0xff] }
   0x4   :  { %181 = vmatpush3.bf16.msra.mxu0 %v180_v5  ;;  %v189_v13 = vpack.c.bf16 %v28_v12, %v27_v11  ;;  %v30_v15 = vld [vmem:[%s286_s1 + $0x48] sm:$0xff]  ;;  %v31_v17 = vld [vmem:[%s286_s1 + $0x50] sm:$0xff]  ;;  %v32_v18 = vld [vmem:[%s286_s1 + $0x58] sm:$0xff] }
   0x5   :  { %182 = vmatprep.subr.bf16.mxu0 %v206_v0  ;;  %v192_v16 = vpack.c.bf16 %v30_v15, %v29_v14  ;;  %v195_v19 = vpack.c.bf16 %v32_v18, %v31_v17  ;;  %v33_v20 = vld [vmem:[%s286_s1 + $0x60] sm:$0xff]  ;;  %v34_v21 = vld [vmem:[%s286_s1 + $0x68] sm:$0xff]  ;;  %v35_v23 = vld [vmem:[%s286_s1 + $0x70] sm:$0xff] }
   0x6   :  { %v198_v22 = vpack.c.bf16 %v34_v21, %v33_v20  ;;  %v36_v24 = vld [vmem:[%s286_s1 + $0x78] sm:$0xff]  ;;  %v20_v26 = vld [vmem:[%s287_s0] sm:$0xff] }
   0x7   :  { %v201_v25 = vpack.c.bf16 %v36_v24, %v35_v23  ;;  %v126_v27 = vld [vmem:[%s288_s2] ss:$0 sm:$0xff] }
   0x8   :  { %184 = vmatpush3.bf16.msra.mxu0 %v183_v7 }
   0x9   :  { %185 = vmatprep.subr.bf16.mxu0 %v206_v0 }
   0xc   :  { %187 = vmatpush3.bf16.msra.mxu0 %v186_v10 }
   0xd   :  { %188 = vmatprep.subr.bf16.mxu0 %v206_v0 }
  0x10   :  { %190 = vmatpush3.bf16.msra.mxu0 %v189_v13 }
  0x11   :  { %191 = vmatprep.subr.bf16.mxu0 %v206_v0 }
  0x14   :  { %193 = vmatpush3.bf16.msra.mxu0 %v192_v16 }
  0x15   :  { %194 = vmatprep.subr.bf16.mxu0 %v206_v0 }
  0x18   :  { %196 = vmatpush3.bf16.msra.mxu0 %v195_v19 }
  0x19   :  { %197 = vmatprep.subr.bf16.mxu0 %v206_v0 }
  0x1c   :  { %199 = vmatpush3.bf16.msra.mxu0 %v198_v22 }
  0x1d   :  { %200 = vmatprep.subr.bf16.mxu0 %v206_v0 }
  0x20   :  { %202 = vmatpush3.bf16.msra.mxu0 %v201_v25 }
  0x23   :  { %177 = vmatmul.mubr.f32.vlgmr.msra.gmra.mrb[0].mxu0 %v20_v26 }
  0xf6   :  { %v103_v28 = vpop.f32.mrb[0].mxu0 }
  0xf7   :  { %v120_v29 = vadd.f32 %v126_v27, %v103_v28  ;;  %v178_v30 = vpop.f32.mrb[1].mxu0 }
  0xf9   :  { %121 = vst [vmem:[%s289_s3] sm:$0xff] %v120_v29 }

</bundles_post_ra>
